<compile_context>
chip_gen: v7x
topology: tpu7x:2x2x1
jax: 0.10.0
libtpu: 0.0.40
codegen_flags: <defaults>
</compile_context>

<pallas_src>
import functools

import jax
import jax.numpy as jnp
from jax import lax
from jax.experimental import pallas as pl
from jax.experimental.pallas import tpu as pltpu


def _shake_shake_kernel(mu_ref, x_ref, w_ref, b_ref, o_ref, *, H, W, NB, OUT_L):
    """NB images per grid step.

    mu_ref : SMEM (N,) f32                 per-sample mixing coefficient
    x_ref  : VMEM (NB, Cin, (H+3)*(W+2))   padded inputs, rows flattened, bf16
    w_ref  : VMEM (2, Cout, 9*Cin) f32     both branches' 3x3 weights
    b_ref  : VMEM (2, Cout, 1)   f32       both branches' biases
    o_ref  : VMEM (NB, Cout, OUT_L)        output slabs (flattened NCHW)
    """
    WS = W + 2                       # row stride of the padded, flattened input
    span = H * WS                    # whole image -> one matmul
    HW = H * W
    base = pl.program_id(0) * NB

    w1 = w_ref[0]                    # (Cout, 9*Cin) f32, hoisted out of the NB loop
    w2 = w_ref[1]
    b1 = b_ref[0]                    # (Cout, 1) f32
    b2 = b_ref[1]

    for i in range(NB):              # static unroll over the images of this block
        mu = mu_ref[base + i]
        # Shake mix folded into weights/bias (conv linearity); eval: mu == 0.5.
        w_mix = (w1 + mu * (w2 - w1)).astype(jnp.bfloat16)     # (Cout, 9*Cin)
        b_mix = b1 + mu * (b2 - b1)                            # (Cout, 1)

        # In-kernel im2col: 9 contiguous lane slices, one per 3x3 tap.
        taps = [x_ref[i, :, kh * WS + kw: kh * WS + kw + span]
                for kh in range(3) for kw in range(3)]
        cols = jnp.concatenate(taps, axis=0)                   # (9*Cin, span) bf16

        # Single MXU matmul per image, f32 accumulation.
        acc = jnp.dot(w_mix, cols, preferred_element_type=jnp.float32)  # (Cout, span)

        # Drop the 2 out-of-row columns per image row -> lane-dense (Cout, H*W),
        # add the premixed bias once (valid columns only), cast, and store.
        valid = jnp.concatenate(
            [acc[:, h * WS: h * WS + W] for h in range(H)], axis=1)
        out = (valid + b_mix).astype(o_ref.dtype)
        if OUT_L != HW:              # pad to a 128-lane multiple -> unmasked stores
            out = jnp.concatenate(
                [out, jnp.zeros((out.shape[0], OUT_L - HW), out.dtype)], axis=1)
        o_ref[i, :, :] = out


def _pick_batch_block(n, bytes_per_image, target_bytes=2 << 20, max_nb=8):
    """Largest NB dividing n such that per-step blocks stay ~target_bytes,
    the grid keeps >= 2 steps (both v7x TensorCores get work), and the static
    in-kernel unroll stays short."""
    nb = 1
    for cand in range(1, min(n, max_nb) + 1):
        if n % cand:
            continue
        if cand > 1 and cand * bytes_per_image > target_bytes:
            break
        if n >= 2 and n // cand < 2:
            break
        nb = cand
    return nb


def shake_shake_forward(x_nchw, params, training=False, mu=None, block_n=None):
    """Forward pass of _ShakeShake with 3x3-conv branches.

    x_nchw : (N, C, H, W) float32 (PyTorch NCHW convention)
    params : (w1, b1, w2, b2) with w*: (3, 3, Cin, Cout) HWIO, b*: (Cout,)
    """
    w1, b1, w2, b2 = params
    N, C, H, W = x_nchw.shape
    Cout = w1.shape[3]
    assert w1.shape == (3, 3, C, Cout) and w2.shape == (3, 3, C, Cout)

    if not training:
        mu = jnp.full((N,), 0.5, dtype=jnp.float32)
    else:
        assert mu is not None and mu.shape == (N,)
        mu = mu.astype(jnp.float32)

    WS = W + 2
    XFLAT = (H + 3) * WS
    HW = H * W
    OUT_L = ((HW + 127) // 128) * 128      # lane-dense output slab (crop if padded)

    # Single pad provides the 3x3 'same' halo plus the slack rows needed by the
    # flattened row-window slices; NCHW is kept end-to-end (no transposes).
    # Note: kernel operands are bf16 with f32 accumulation -> small deviation
    # from an f32-exact conv (documented, tolerance-tested below).
    x_flat = (jnp.pad(x_nchw, ((0, 0), (0, 0), (1, 2), (1, 1)))
              .astype(jnp.bfloat16)
              .reshape(N, C, XFLAT))

    # Both branches' weights/biases, kept in f32; the kernel pre-mixes them per
    # sample (rows ordered (kh, kw, cin) to match the im2col row order).
    w_stack = jnp.stack(
        [jnp.transpose(w1, (3, 0, 1, 2)).reshape(Cout, 9 * C),
         jnp.transpose(w2, (3, 0, 1, 2)).reshape(Cout, 9 * C)], axis=0
    ).astype(jnp.float32)                                   # (2, Cout, 9*C)
    b_stack = jnp.stack([b1, b2], axis=0).reshape(2, Cout, 1).astype(jnp.float32)

    # Batch blocking: amortize per-grid-step overhead across images while
    # keeping (double-buffered) input + output blocks plus in-kernel temps a
    # few MiB total -- under every chip's scoped-VMEM budget.
    bytes_per_image = C * XFLAT * 2 + Cout * OUT_L * 4
    if block_n is None:
        block_n = _pick_batch_block(N, bytes_per_image)
    assert N % block_n == 0

    kernel = functools.partial(_shake_shake_kernel,
                               H=H, W=W, NB=block_n, OUT_L=OUT_L)

    out_flat = pl.pallas_call(
        kernel,
        out_shape=jax.ShapeDtypeStruct((N, Cout, OUT_L), x_nchw.dtype),
        grid=(N // block_n,),
        in_specs=[
            pl.BlockSpec(memory_space=pltpu.MemorySpace.SMEM),        # mu (N,)
            pl.BlockSpec((block_n, C, XFLAT), lambda n: (n, 0, 0)),   # x (flat, bf16)
            pl.BlockSpec((2, Cout, 9 * C), lambda n: (0, 0, 0)),      # w1/w2 (f32)
            pl.BlockSpec((2, Cout, 1), lambda n: (0, 0, 0)),          # b1/b2 (f32)
        ],
        out_specs=pl.BlockSpec((block_n, Cout, OUT_L), lambda n: (n, 0, 0)),
        compiler_params=pltpu.CompilerParams(
            dimension_semantics=("parallel",),
            vmem_limit_bytes=32 * 1024 * 1024),   # explicit budget, safe on v5e/v6e/v7x
    )(mu, x_flat, w_stack, b_stack)

    out = out_flat[:, :, :HW] if OUT_L != HW else out_flat
    return out.reshape(N, Cout, H, W)             # already NCHW, free reshape


def _ref_conv(x_nchw, w_hwio, b):
    y = lax.conv_general_dilated(
        x_nchw.astype(jnp.float32), w_hwio.astype(jnp.float32),
        window_strides=(1, 1), padding=((1, 1), (1, 1)),
        dimension_numbers=("NCHW", "HWIO", "NCHW"))
    return y + b.reshape(1, -1, 1, 1)


if __name__ == "__main__":
    key = jax.random.PRNGKey(0)
    k_x, k_w1, k_b1, k_w2, k_b2, k_mu = jax.random.split(key, 6)

    N, C, H, W = 2, 4, 16, 16
    Cout = 4  # shake-shake branches preserve channel count

    x = jax.random.normal(k_x, (N, C, H, W), jnp.float32)
    w1 = jax.random.normal(k_w1, (3, 3, C, Cout), jnp.float32) * 0.1
    b1 = jax.random.normal(k_b1, (Cout,), jnp.float32) * 0.1
    w2 = jax.random.normal(k_w2, (3, 3, C, Cout), jnp.float32) * 0.1
    b2 = jax.random.normal(k_b2, (Cout,), jnp.float32) * 0.1
    params = (w1, b1, w2, b2)

    # eval mode: 0.5 * (a + b)
    out_eval = shake_shake_forward(x, params, training=False)
    # training mode: per-sample mu ~ U[0,1)
    mu = jax.random.uniform(k_mu, (N,), jnp.float32)
    out_train = shake_shake_forward(x, params, training=True, mu=mu)
    jax.block_until_ready((out_eval, out_train))

    # Pure-JAX f32 reference (kernel uses bf16 operands -> relaxed tolerance).
    a_ref = _ref_conv(x, w1, b1)
    b_ref = _ref_conv(x, w2, b2)
    ref_eval = 0.5 * (a_ref + b_ref)
    ref_train = a_ref + mu[:, None, None, None] * (b_ref - a_ref)

    assert out_eval.shape == (N, Cout, H, W)
    assert jnp.allclose(out_eval, ref_eval, atol=3e-2, rtol=3e-2)
    assert jnp.allclose(out_train, ref_train, atol=3e-2, rtol=3e-2)

    print("KERNEL_OK")
</pallas_src>

<mosaic_0001>
module attributes {stable_mosaic.version = 11 : i64} {
  func.func @_shake_shake_kernel(%arg0: i32, %arg1: memref<2xf32, #tpu.memory_space<smem>>, %arg2: memref<1x4x342xbf16, #tpu.memory_space<vmem>>, %arg3: memref<2x4x36xf32, #tpu.memory_space<vmem>>, %arg4: memref<2x4x1xf32, #tpu.memory_space<vmem>>, %arg5: memref<1x4x256xf32, #tpu.memory_space<vmem>>) attributes {dimension_semantics = [#tpu.dimension_semantics<parallel>], iteration_bounds = array<i64: 2>, scalar_prefetch = 0 : i64, scratch_operands = 0 : i64, tpu.core_type = #tpu.core_type<tc>, window_params = [{transform_indices = @transform_0, window_bounds = array<i64: 2>}, {transform_indices = @transform_1, window_bounds = array<i64: 1, 4, 342>}, {pipeline_mode = #tpu.pipeline_mode<synchronous>, transform_indices = @transform_2, window_bounds = array<i64: 2, 4, 36>}, {pipeline_mode = #tpu.pipeline_mode<synchronous>, transform_indices = @transform_3, window_bounds = array<i64: 2, 4, 1>}, {transform_indices = @transform_4, window_bounds = array<i64: 1, 4, 256>}]} {
    %c1_i32 = arith.constant 1 : i32
    %0 = arith.muli %arg0, %c1_i32 : i32
    %c0 = arith.constant 0 : index
    %c0_0 = arith.constant 0 : index
    %c0_1 = arith.constant 0 : index
    %1 = vector.load %arg3[%c0, %c0_0, %c0_1] : memref<2x4x36xf32, #tpu.memory_space<vmem>>, vector<1x4x36xf32>
    %2 = vector.shape_cast %1 : vector<1x4x36xf32> to vector<4x36xf32>
    %c1 = arith.constant 1 : index
    %c0_2 = arith.constant 0 : index
    %c0_3 = arith.constant 0 : index
    %3 = vector.load %arg3[%c1, %c0_2, %c0_3] : memref<2x4x36xf32, #tpu.memory_space<vmem>>, vector<1x4x36xf32>
    %4 = vector.shape_cast %3 : vector<1x4x36xf32> to vector<4x36xf32>
    %c0_4 = arith.constant 0 : index
    %c0_5 = arith.constant 0 : index
    %c0_6 = arith.constant 0 : index
    %5 = vector.load %arg4[%c0_4, %c0_5, %c0_6] : memref<2x4x1xf32, #tpu.memory_space<vmem>>, vector<1x4x1xf32>
    %6 = vector.shape_cast %5 : vector<1x4x1xf32> to vector<4x1xf32>
    %c1_7 = arith.constant 1 : index
    %c0_8 = arith.constant 0 : index
    %c0_9 = arith.constant 0 : index
    %7 = vector.load %arg4[%c1_7, %c0_8, %c0_9] : memref<2x4x1xf32, #tpu.memory_space<vmem>>, vector<1x4x1xf32>
    %8 = vector.shape_cast %7 : vector<1x4x1xf32> to vector<4x1xf32>
    %c0_i32 = arith.constant 0 : i32
    %9 = arith.addi %0, %c0_i32 : i32
    %10 = arith.index_cast %9 : i32 to index
    %11 = memref.load %arg1[%10] : memref<2xf32, #tpu.memory_space<smem>>
    %12 = arith.subf %4, %2 : vector<4x36xf32>
    %13 = vector.broadcast %11 : f32 to vector<4x36xf32>
    %14 = arith.mulf %13, %12 : vector<4x36xf32>
    %15 = arith.addf %2, %14 : vector<4x36xf32>
    %16 = arith.truncf %15 : vector<4x36xf32> to vector<4x36xbf16>
    %17 = arith.subf %8, %6 : vector<4x1xf32>
    %18 = vector.broadcast %11 : f32 to vector<4x1xf32>
    %19 = arith.mulf %18, %17 : vector<4x1xf32>
    %20 = arith.addf %6, %19 : vector<4x1xf32>
    %c0_10 = arith.constant 0 : index
    %c0_11 = arith.constant 0 : index
    %c0_12 = arith.constant 0 : index
    %21 = vector.load %arg2[%c0_10, %c0_11, %c0_12] : memref<1x4x342xbf16, #tpu.memory_space<vmem>>, vector<1x4x288xbf16>
    %22 = vector.shape_cast %21 : vector<1x4x288xbf16> to vector<4x288xbf16>
    %c0_13 = arith.constant 0 : index
    %c0_14 = arith.constant 0 : index
    %c1_15 = arith.constant 1 : index
    %23 = vector.load %arg2[%c0_13, %c0_14, %c1_15] : memref<1x4x342xbf16, #tpu.memory_space<vmem>>, vector<1x4x288xbf16>
    %24 = vector.shape_cast %23 : vector<1x4x288xbf16> to vector<4x288xbf16>
    %c0_16 = arith.constant 0 : index
    %c0_17 = arith.constant 0 : index
    %c2 = arith.constant 2 : index
    %25 = vector.load %arg2[%c0_16, %c0_17, %c2] : memref<1x4x342xbf16, #tpu.memory_space<vmem>>, vector<1x4x288xbf16>
    %26 = vector.shape_cast %25 : vector<1x4x288xbf16> to vector<4x288xbf16>
    %c0_18 = arith.constant 0 : index
    %c0_19 = arith.constant 0 : index
    %c18 = arith.constant 18 : index
    %27 = vector.load %arg2[%c0_18, %c0_19, %c18] : memref<1x4x342xbf16, #tpu.memory_space<vmem>>, vector<1x4x288xbf16>
    %28 = vector.shape_cast %27 : vector<1x4x288xbf16> to vector<4x288xbf16>
    %c0_20 = arith.constant 0 : index
    %c0_21 = arith.constant 0 : index
    %c19 = arith.constant 19 : index
    %29 = vector.load %arg2[%c0_20, %c0_21, %c19] : memref<1x4x342xbf16, #tpu.memory_space<vmem>>, vector<1x4x288xbf16>
    %30 = vector.shape_cast %29 : vector<1x4x288xbf16> to vector<4x288xbf16>
    %c0_22 = arith.constant 0 : index
    %c0_23 = arith.constant 0 : index
    %c20 = arith.constant 20 : index
    %31 = vector.load %arg2[%c0_22, %c0_23, %c20] : memref<1x4x342xbf16, #tpu.memory_space<vmem>>, vector<1x4x288xbf16>
    %32 = vector.shape_cast %31 : vector<1x4x288xbf16> to vector<4x288xbf16>
    %c0_24 = arith.constant 0 : index
    %c0_25 = arith.constant 0 : index
    %c36 = arith.constant 36 : index
    %33 = vector.load %arg2[%c0_24, %c0_25, %c36] : memref<1x4x342xbf16, #tpu.memory_space<vmem>>, vector<1x4x288xbf16>
    %34 = vector.shape_cast %33 : vector<1x4x288xbf16> to vector<4x288xbf16>
    %c0_26 = arith.constant 0 : index
    %c0_27 = arith.constant 0 : index
    %c37 = arith.constant 37 : index
    %35 = vector.load %arg2[%c0_26, %c0_27, %c37] : memref<1x4x342xbf16, #tpu.memory_space<vmem>>, vector<1x4x288xbf16>
    %36 = vector.shape_cast %35 : vector<1x4x288xbf16> to vector<4x288xbf16>
    %c0_28 = arith.constant 0 : index
    %c0_29 = arith.constant 0 : index
    %c38 = arith.constant 38 : index
    %37 = vector.load %arg2[%c0_28, %c0_29, %c38] : memref<1x4x342xbf16, #tpu.memory_space<vmem>>, vector<1x4x288xbf16>
    %38 = vector.shape_cast %37 : vector<1x4x288xbf16> to vector<4x288xbf16>
    %39 = tpu.concatenate %22, %24, %26, %28, %30, %32, %34, %36, %38 in 0 : vector<4x288xbf16>, vector<4x288xbf16>, vector<4x288xbf16>, vector<4x288xbf16>, vector<4x288xbf16>, vector<4x288xbf16>, vector<4x288xbf16>, vector<4x288xbf16>, vector<4x288xbf16> -> vector<36x288xbf16>
    %cst = arith.constant dense<0.000000e+00> : vector<4x288xf32>
    %40 = tpu.matmul %16, %39, %cst {dimension_numbers = #tpu.dot_dimension_numbers<[1], [0], [0], [1], [0, 0, 1, 1], [], []>} : vector<4x36xbf16>, vector<36x288xbf16>, vector<4x288xf32> -> vector<4x288xf32>
    %41 = vector.extract_strided_slice %40 {offsets = [0, 0], sizes = [4, 16], strides = [1, 1]} : vector<4x288xf32> to vector<4x16xf32>
    %42 = vector.extract_strided_slice %40 {offsets = [0, 18], sizes = [4, 16], strides = [1, 1]} : vector<4x288xf32> to vector<4x16xf32>
    %43 = vector.extract_strided_slice %40 {offsets = [0, 36], sizes = [4, 16], strides = [1, 1]} : vector<4x288xf32> to vector<4x16xf32>
    %44 = vector.extract_strided_slice %40 {offsets = [0, 54], sizes = [4, 16], strides = [1, 1]} : vector<4x288xf32> to vector<4x16xf32>
    %45 = vector.extract_strided_slice %40 {offsets = [0, 72], sizes = [4, 16], strides = [1, 1]} : vector<4x288xf32> to vector<4x16xf32>
    %46 = vector.extract_strided_slice %40 {offsets = [0, 90], sizes = [4, 16], strides = [1, 1]} : vector<4x288xf32> to vector<4x16xf32>
    %47 = vector.extract_strided_slice %40 {offsets = [0, 108], sizes = [4, 16], strides = [1, 1]} : vector<4x288xf32> to vector<4x16xf32>
    %48 = vector.extract_strided_slice %40 {offsets = [0, 126], sizes = [4, 16], strides = [1, 1]} : vector<4x288xf32> to vector<4x16xf32>
    %49 = vector.extract_strided_slice %40 {offsets = [0, 144], sizes = [4, 16], strides = [1, 1]} : vector<4x288xf32> to vector<4x16xf32>
    %50 = vector.extract_strided_slice %40 {offsets = [0, 162], sizes = [4, 16], strides = [1, 1]} : vector<4x288xf32> to vector<4x16xf32>
    %51 = vector.extract_strided_slice %40 {offsets = [0, 180], sizes = [4, 16], strides = [1, 1]} : vector<4x288xf32> to vector<4x16xf32>
    %52 = vector.extract_strided_slice %40 {offsets = [0, 198], sizes = [4, 16], strides = [1, 1]} : vector<4x288xf32> to vector<4x16xf32>
    %53 = vector.extract_strided_slice %40 {offsets = [0, 216], sizes = [4, 16], strides = [1, 1]} : vector<4x288xf32> to vector<4x16xf32>
    %54 = vector.extract_strided_slice %40 {offsets = [0, 234], sizes = [4, 16], strides = [1, 1]} : vector<4x288xf32> to vector<4x16xf32>
    %55 = vector.extract_strided_slice %40 {offsets = [0, 252], sizes = [4, 16], strides = [1, 1]} : vector<4x288xf32> to vector<4x16xf32>
    %56 = vector.extract_strided_slice %40 {offsets = [0, 270], sizes = [4, 16], strides = [1, 1]} : vector<4x288xf32> to vector<4x16xf32>
    %57 = tpu.concatenate %41, %42, %43, %44, %45, %46, %47, %48, %49, %50, %51, %52, %53, %54, %55, %56 in 1 : vector<4x16xf32>, vector<4x16xf32>, vector<4x16xf32>, vector<4x16xf32>, vector<4x16xf32>, vector<4x16xf32>, vector<4x16xf32>, vector<4x16xf32>, vector<4x16xf32>, vector<4x16xf32>, vector<4x16xf32>, vector<4x16xf32>, vector<4x16xf32>, vector<4x16xf32>, vector<4x16xf32>, vector<4x16xf32> -> vector<4x256xf32>
    %58 = vector.broadcast %20 : vector<4x1xf32> to vector<4x256xf32>
    %59 = arith.addf %57, %58 : vector<4x256xf32>
    %c0_30 = arith.constant 0 : index
    %c0_31 = arith.constant 0 : index
    %c0_32 = arith.constant 0 : index
    %60 = vector.load %arg5[%c0_30, %c0_31, %c0_32] : memref<1x4x256xf32, #tpu.memory_space<vmem>>, vector<1x4x256xf32>
    %61 = vector.shape_cast %60 : vector<1x4x256xf32> to vector<4x256xf32>
    %62 = vector.shape_cast %59 : vector<4x256xf32> to vector<1x4x256xf32>
    tpu.vector_store %arg5[%c0_30, %c0_31, %c0_32], %62 {strides = array<i32>} : memref<1x4x256xf32, #tpu.memory_space<vmem>>, vector<1x4x256xf32>,
    return
  }
  func.func @transform_0(%arg0: i32) -> i32 {
    %c0_i32 = arith.constant 0 : i32
    %c0_i32_0 = arith.constant 0 : i32
    return %c0_i32 : i32
  }
  func.func @transform_1(%arg0: i32) -> (i32, i32, i32) {
    %c0_i32 = arith.constant 0 : i32
    %c0_i32_0 = arith.constant 0 : i32
    %c0_i32_1 = arith.constant 0 : i32
    return %arg0, %c0_i32, %c0_i32_0 : i32, i32, i32
  }
  func.func @transform_2(%arg0: i32) -> (i32, i32, i32) {
    %c0_i32 = arith.constant 0 : i32
    %c0_i32_0 = arith.constant 0 : i32
    %c0_i32_1 = arith.constant 0 : i32
    %c0_i32_2 = arith.constant 0 : i32
    return %c0_i32, %c0_i32_0, %c0_i32_1 : i32, i32, i32
  }
  func.func @transform_3(%arg0: i32) -> (i32, i32, i32) {
    %c0_i32 = arith.constant 0 : i32
    %c0_i32_0 = arith.constant 0 : i32
    %c0_i32_1 = arith.constant 0 : i32
    %c0_i32_2 = arith.constant 0 : i32
    return %c0_i32, %c0_i32_0, %c0_i32_1 : i32, i32, i32
  }
  func.func @transform_4(%arg0: i32) -> (i32, i32, i32) {
    %c0_i32 = arith.constant 0 : i32
    %c0_i32_0 = arith.constant 0 : i32
    %c0_i32_1 = arith.constant 0 : i32
    return %arg0, %c0_i32, %c0_i32_0 : i32, i32, i32
  }
}

</mosaic_0001>

<bundles_post_ra>
// kernel: tpu_custom_call.1
= control target key start
LH: loop header
LB: loop body
LE: loop exit
PB: predicated region body
PF: predicated region fallthrough
CT: control target
= control target key end

     0   :  { %9 = vsyncpa [#allocation5], 0  ;;  %s1211_s0 = inlined_call_operand.vmem [shape: f32[2], index: 0, kind: input, shape index: {}]   ;;  %s1212_s1 = inlined_call_operand.vmem [shape: bf16[2,4,342], index: 1, kind: input, shape index: {}]   ;;  %s1213_s2 = inlined_call_operand.hbm [shape: f32[2,4,36], index: 2, kind: input, shape index: {}]   ;;  %s1214_s3 = inlined_call_operand.vmem [shape: f32[2,4,1], index: 3, kind: input, shape index: {}]   ;;  %s1215_s4 = inlined_call_operand.hbm [shape: f32[2,4,256], index: 4, kind: output, shape index: {}]  }
   0x1   :  { %10 = vsyncpa [#allocation3], 0 }
   0x2   :  { %11 = vsyncpa [#allocation4], 0 }
   0x3   :  { %13 = vsyncpa [#allocation4 + $0x1], 0  ;;  %s969_s15 = smov 0   ;;  %s971_s16 = smov 0  }
   0x4   :  { %s973_s17 = smov 0   ;;  %s975_s18 = smov 0  }
   0x5 LB: > { %s990_s19 = sadd.s32 4294967295, %s913_s18   ;;  %s675_s20 = sadd.s32 4294967294, %s913_s18   ;;  %s913_s18 = sphi %s975_s18, %s1229_s18   ;;  %s909_s17 = sphi %s973_s17, %s1228_s17   ;;  %s905_s16 = sphi %s971_s16, %s1227_s16   ;;  %s901_s15 = sphi %s969_s15, %s1226_s15  }
   0x6   : > { %s994_s21 = sadd.s32 1, %s913_s18   ;;  %s115_s22 = sadd.s32 1, %s909_s17 }
   0x7   : > { %s112_s23 = ssub.s32 %s913_s18, %s994_s21  ;;  %p125_p0 = scmp.ne.s32.totalorder %s909_s17, %s905_s16 }
   0x8   : > { %p113_p1 = scmp.eq.s32.totalorder %s112_s23, 0  ;;  %p126_p2 = scmp.eq.s32.totalorder %s990_s19, 1 }
   0x9   : > { %p131_p3 = scmp.ne.s32.totalorder %s905_s16, %s901_s15  ;;  %p132_p4 = scmp.eq.s32.totalorder %s675_s20, 1 }
   0xa   : > { %s1005_s24 = scalar_select %p113_p1, %s909_s17, %s115_s22  }
   0xb   : > { %p1007_p5 = por %p126_p2, %p125_p0  ;;  %p1011_p6 = por %p132_p4, %p131_p3 }
   0xc   : > { %p676_p7 = scmp.ge.s32.totalorder %s913_s18, 1  ;;  %p139_p8 = scmp.lt.s32.totalorder %s913_s18, 3 }
   0xd   : > { %s1218_s26 = scalar_select %p1011_p6, 1, 0 }
   0xe   : > { %p1216_p9 = scmp.eq.s32.totalorder %s990_s19, 0  ;;  %p1018_p10 = pnand %p676_p7, %p139_p8 }
   0xf   : > { %s152_s30 = sshll.u32 %s1211_s0, 4  ;;  %s915_s5 = smov [#allocation6]   ;;  %s153_s30 = int_to_ptr.vmem [resolvable:$true] %s152_s30 }
  0x10   : > { %p720_p11 = pneg %p1018_p10  ;;  %s162_s6 = sshll.u32 %s915_s5, 4  ;;  %s1033_s6 = int_to_ptr.vmem [resolvable:$true] %s162_s6 }
  0x11   : > { %s800_s8 = scalar_lea.vmem %s153_s30, 16  ;;  %p808_p3 = scmp.lt.s32.totalorder %s153_s30, %s153_s30 }
  0x12   : > { %p1029_p12 = pnand %p1216_p9, %p720_p11  ;;  %p801_p13 = scmp.ne.s32.totalorder %s153_s30, %s800_s8 }
  0x13   : > { %p809_p4 = scmp.lt.s32.totalorder %s800_s8, %s800_s8 }
  0x14   : > { %p802_p0 = pneg %p1029_p12 }
  0x15   : > { %p810_p7 = por %p809_p4, %p808_p3 }
  0x16   : > { %p803_p1 = pnand %p802_p0, %p801_p13 }
  0x18   : > { %p804_p2 = pneg %p803_p1 }
  0x1a   : > { %p811_p8 = pnand %p810_p7, %p804_p2 }
  0x1c   : > { %814 = shalt.err (!%p811_p8)
}
  0x1d   : > { %s916_s9 = smov [#allocation2]   ;;  %s815_s12 = scalar_lea.hbm %s1213_s2, 128 }
  0x1e   : > { %723 = dma.vmem_to_smem (!%p1029_p12), %s153_s30, 16, %s916_s9, [#allocation5]  }
  0x1f   : > { %p816_p11 = scmp.ne.s32.totalorder %s1213_s2, %s815_s12  ;;  %p822_p2 = scmp.lt.u32.totalorder %s815_s12, %s1213_s2 }
  0x21   : > { %p818_p13 = pnand %p816_p11, %p802_p0 }
  0x23   : > { %p819_p1 = pneg %p818_p13 }
  0x25   : > { %p824_p3 = pnand %p822_p2, %p819_p1 }
  0x27   : > { %827 = shalt.err (!%p824_p3)
}
  0x28   : > { %s828_s23 = scalar_lea.vmem %s1033_s6, 128  ;;  %p836_p9 = scmp.lt.s32.totalorder %s1033_s6, %s1033_s6 }
  0x29   : > { %p829_p4 = scmp.ne.s32.totalorder %s1033_s6, %s828_s23  ;;  %p837_p11 = scmp.lt.s32.totalorder %s828_s23, %s828_s23 }
  0x2b   : > { %p831_p7 = pnand %p829_p4, %p802_p0  ;;  %p838_p13 = por %p837_p11, %p836_p9 }
  0x2d   : > { %p832_p8 = pneg %p831_p7 }
  0x2f   : > { %p839_p6 = pnand %p838_p13, %p832_p8 }
  0x31   : > { %842 = shalt.err (!%p839_p6)
}
  0x32   : > { %s917_s28 = smov 64   ;;  %s918_s29 = smov 4  }
  0x33   : > { %726 = dma.hbm_to_vmem [thread:$0]  (!%p1029_p12), %s1213_s2, 128, %s1033_s6, [#allocation3], %s917_s28, %s917_s28, %s918_s29  }
  0x34   : > { %189 = sbr.rel (%p1018_p10) target bundleno = 619 (0x26b), region = 36  ;;  %p1221_p0 = scmp.eq.s32.totalorder (!%p1018_p10), %s990_s19, 0 }
  0x3b   : > { %888 = dma.done.wait (%p1221_p0), [#allocation5], 16   ;;  %p1222_p1 = pmov %p1221_p0 }
  0x3c   : > { %p1223_p6 = pmov %p1221_p0 }
  0x3d   : > { %890 = vsyncadd (%p1222_p1), [#allocation5], 4294967280 }
  0x3e   : > { %892 = dma.done.wait (%p1223_p6), [#allocation3], 128   ;;  %p1224_p9 = pmov %p1221_p0 }
  0x40   : > { %894 = vsyncadd (%p1224_p9), [#allocation3], 4294967168 }
  0x41   : > { %199 = sfence }
  0x42   : > { %p220_p2 = scmp.lt.s32.totalorder %s990_s19, 1  ;;  %v247_v0 = vlaneseq  ;;  %v919_v1 = vmov 1983009808   ;;  %s920_s10 = smov 126   ;;  %v922_v11 = vmov 0.0   ;;  %vm927_vm0 = vmmov 0  }
  0x43   : > { %v245_v2 = vunpack.c.l.s4 %v919_v1  ;;  %s921_s11 = smov 127   ;;  %699 = vmatprep.subr.bf16.mxu1 %v922_v11  ;;  %s923_s12 = smov 110   ;;  %705 = vmatprep.mubr.msk.bf16.mxu1 %vm927_vm0, %v922_v11  ;;  %v928_v18 = vmov 0   ;;  %v229_v19 = vld [vmem:[%s1214_s3] sm:$0xf]  ;;  %vm274_vm1 = vcmask 1039360  }
  0x44   : > { %s221_s27 = scalar_select %p220_p2, %s990_s19, 1  ;;  %v248_v3 = vshrl.u32 %v247_v0, 7  ;;  %439 = vmatprep.mubr.bf16.mxu0 %v928_v18  ;;  %796 = vset.pattern.permute.xlu1 %v928_v18  ;;  %v685_v20 = vld [vmem:[%s1214_s3 + $0x4] sm:$0xf]  ;;  %vm343_vm2 = vcmask 1041408   ;;  %vm295_vm3 = vcmask 900096  }
  0x45   : > { %v246_v4 = vunpack.c.0.s8 %v245_v2  ;;  %s924_s13 = smov 109   ;;  %s925_s14 = smov 108   ;;  %797 = vset.pattern.permute.xlu0 %v928_v18  ;;  %v238_v21 = vsub.f32 %v685_v20, %v229_v19  ;;  %vm285_vm4 = vcmask 1031168   ;;  %vm360_vm5 = vcmask 1045504   ;;  %v226_v56 = vld [vmem:[#allocation6] sm:$0xf] }
  0x46   : > { %s709_s6 = smul.u32 6, %s221_s27  ;;  %s926_s20 = smov 92   ;;  %vm353_vm6 = vcmask 1043456   ;;  %v228_v57 = vld [vmem:[#allocation6 + $0x4] sm:$0xf]  ;;  %vm313_vm7 = vcmask 883712  }
  0x47   : > { %v249_v5 = vsub.s32 %v246_v4, %v248_v3  ;;  %s1104_s22 = sld [smem:[#allocation2 + %s990_s19]]  ;;  %s929_s23 = smov 91   ;;  %vm322_vm8 = vcmask 752640   ;;  %vm304_vm9 = vcmask 891904   ;;  %v233_v60 = vsub.f32 %v228_v57, %v226_v56 }
  0x48   : > { %s224_s9 = scalar_lea.vmem %s1212_s1, %s709_s6  ;;  %s930_s27 = smov 90   ;;  %vm331_vm10 = vcmask 744448   ;;  %vm340_vm11 = vcmask 736256   ;;  %vm394_vm12 = vcmask 293888   ;;  %vm544_vm13 = vcmask 130048  }
  0x49   : > { %v241_v6 = vld [vmem:[%s224_s9] sm:$0x3f]  ;;  %s931_s6 = smov 100   ;;  %s932_s7 = smov 114   ;;  %vm546_vm14 = vcmask 261120   ;;  %vm548_vm15 = vcmask 392192  }
  0x4a   : > { %v1082_v7 = vrot.slane %v241_v6, %v249_v5  ;;  %v259_v8 = vcombine.low %v241_v6, %v241_v6  ;;  %v243_v10 = vcombine.high %v241_v6, %v241_v6  ;;  %s933_s8 = smov 124   ;;  %s934_s9 = smov 112   ;;  %vm538_vm0 = vcmask 818176  }
  0x4b   : > { %s941_s28 = smov 102   ;;  %s942_s29 = smov 98  }
  0x4c   : > { %281 = vrot.lane.b32.xlu1 %v1082_v7, %s920_s10  ;;  %272 = vrot.lane.b32.xlu0 %v1082_v7, %s921_s11  ;;  %v266_v9 = vrot.slane %v259_v8, %v249_v5  ;;  %v277_v13 = vcombine.low %v1082_v7, %v1082_v7  ;;  %v257_v14 = vrot.slane %v243_v10, %v249_v5  ;;  %s694_s30 = sshll.u32 %s990_s19, 7  ;;  %s943_s19 = smov [#allocation7]  }
  0x4d   : > { %v258_v16 = vcombine.high %v1082_v7, %v1082_v7  ;;  %v234_v22 = vstv %s1104_s22  ;;  %s939_s22 = smov 104  }
  0x4e   : > { %v267_v12 = vcombine.high %v266_v9, %v266_v9  ;;  %v278_v15 = vcombine.low %v257_v14, %v257_v14  ;;  %v288_v17 = vcombine.low %v266_v9, %v266_v9  ;;  %v239_v23 = vmul.f32 %v238_v21, %v234_v22 }
  0x4f   : > { %v235_v5 = vmul.f32 %v234_v22, %v233_v60 }
  0x50   : > { %268 = vrot.lane.b32.xlu1 %v266_v9, %s921_s11  ;;  %291 = vrot.lane.b32.xlu0 %v266_v9, %s923_s12  ;;  %v240_v24 = vadd.f32 %v239_v23, %v229_v19 }
  0x51   : > { %v236_v19 = vadd.f32 %v235_v5, %v226_v56 }
  0x54   : > { %270 = vrot.lane.b32.xlu0 %v267_v12, %s921_s11  ;;  %279 = vrot.lane.b32.xlu1 %v277_v13, %s920_s10  ;;  %s935_s11 = smov 122  }
  0x58   : > { %293 = vrot.lane.b32.xlu1 %v277_v13, %s923_s12  ;;  %283 = vrot.lane.b32.xlu0 %v278_v15, %s920_s10 }
  0x5c   : > { %300 = vrot.lane.b32.xlu1 %v258_v16, %s924_s13  ;;  %289 = vrot.lane.b32.xlu0 %v288_v17, %s923_s12 }
  0x60   : > { %309 = vrot.lane.b32.xlu1 %v267_v12, %s925_s14  ;;  %302 = vrot.lane.b32.xlu0 %v257_v14, %s924_s13 }
  0x64   : > { %298 = vrot.lane.b32.xlu1 %v1082_v7, %s924_s13  ;;  %311 = vrot.lane.b32.xlu0 %v1082_v7, %s925_s14  ;;  %s936_s13 = smov 120  }
  0x68   : > { %318 = vrot.lane.b32.xlu1 %v1082_v7, %s926_s20  ;;  %307 = vrot.lane.b32.xlu0 %v266_v9, %s925_s14 }
  0x6c   : > { %316 = vrot.lane.b32.xlu1 %v277_v13, %s926_s20  ;;  %320 = vrot.lane.b32.xlu0 %v278_v15, %s926_s20  ;;  %s937_s20 = smov 106  }
  0x70   : > { %329 = vrot.lane.b32.xlu1 %v277_v13, %s929_s23  ;;  %327 = vrot.lane.b32.xlu0 %v266_v9, %s929_s23 }
  0x74   : > { %334 = vrot.lane.b32.xlu1 %v1082_v7, %s930_s27  ;;  %325 = vrot.lane.b32.xlu0 %v288_v17, %s929_s23  ;;  %s940_s23 = smov 116  }
  0x78   : > { %338 = vrot.lane.b32.xlu1 %v257_v14, %s930_s27  ;;  %336 = vrot.lane.b32.xlu0 %v258_v16, %s930_s27 }
  0x7c   : > { %567 = vperm.xlu1 %796, %v240_v24  }
  0xbe   : > { %v282_v25 = vpop.permute.xlu1 %281  ;;  %v273_v26 = vpop.permute.xlu0 %272 }
  0xbf   : > { %v352_v33 = vsel %vm343_vm2, %v257_v14, %v273_v26 }
  0xc2   : > { %v269_v27 = vpop.permute.xlu1 %268  ;;  %v292_v28 = vpop.permute.xlu0 %291 }
  0xc6   : > { %v271_v29 = vpop.permute.xlu0 %270  ;;  %v280_v30 = vpop.permute.xlu1 %279 }
  0xc7   : > { %v276_v31 = vsel %vm274_vm1, %v271_v29, %v273_v26  ;;  %v275_v32 = vsel %vm274_vm1, %v269_v27, %v271_v29  ;;  %v286_v41 = vsel %vm285_vm4, %v280_v30, %v282_v25  ;;  %vm550_vm1 = vcmask 523264  }
  0xc8   : > { %v349_v36 = vsel %vm343_vm2, %v258_v16, %v276_v31  ;;  %v346_v40 = vsel %vm343_vm2, %v1082_v7, %v275_v32 }
  0xc9   : > { %v355_v48 = vsel %vm353_vm6, %v346_v40, %v286_v41 }
  0xca   : > { %v294_v34 = vpop.permute.xlu1 %293  ;;  %v284_v35 = vpop.permute.xlu0 %283 }
  0xcb   : > { %v297_v37 = vsel %vm295_vm3, %v292_v28, %v294_v34  ;;  %v287_v38 = vsel %vm285_vm4, %v282_v25, %v284_v35  ;;  %v359_v39 = vsel %vm353_vm6, %v352_v33, %v284_v35  ;;  %vm556_vm4 = vcmask 916480  }
  0xcc   : > { %v368_v42 = vsel %vm360_vm5, %v359_v39, %v294_v34  ;;  %v357_v43 = vsel %vm353_vm6, %v349_v36, %v287_v38 }
  0xcd   : > { %700 = vmatpush3.bf16.msra.mxu1 %v368_v42  ;;  %v365_v44 = vsel %vm360_vm5, %v357_v43, %v297_v37 }
  0xce   : > { %v301_v45 = vpop.permute.xlu1 %300  ;;  %407 = vmatprep.subr.bf16.mxu0 %v365_v44  ;;  %v290_v46 = vpop.permute.xlu0 %289  ;;  %701 = vmatprep.subr.bf16.mxu1 %v922_v11 }
  0xcf   : > { %v296_v47 = vsel %vm295_vm3, %v290_v46, %v292_v28  ;;  %vm554_vm3 = vcmask 785408  }
  0xd0   : > { %v362_v49 = vsel %vm360_vm5, %v355_v48, %v296_v47 }
  0xd1   : > { %408 = vmatpush1.bf16.msra.mxu0 %v362_v49 }
  0xd2   : > { %v310_v50 = vpop.permute.xlu1 %309  ;;  %v303_v51 = vpop.permute.xlu0 %302 }
  0xd3   : > { %v306_v63 = vsel %vm304_vm9, %v301_v45, %v303_v51 }
  0xd6   : > { %v299_v52 = vpop.permute.xlu1 %298  ;;  %v312_v53 = vpop.permute.xlu0 %311 }
  0xd7   : > { %v315_v61 = vsel %vm313_vm7, %v310_v50, %v312_v53  ;;  %v378_v0 = vsel %vm343_vm2, %v303_v51, %v312_v53  ;;  %v305_v13 = vsel %vm304_vm9, %v299_v52, %v301_v45 }
  0xd8   : > { %v375_v1 = vsel %vm343_vm2, %v306_v63, %v315_v61 }
  0xda   : > { %v319_v54 = vpop.permute.xlu1 %318  ;;  %v308_v55 = vpop.permute.xlu0 %307 }
  0xdb   : > { %v314_v6 = vsel %vm313_vm7, %v308_v55, %v310_v50 }
  0xdc   : > { %v372_v14 = vsel %vm343_vm2, %v305_v13, %v314_v6 }
  0xde   : > { %v317_v58 = vpop.permute.xlu1 %316  ;;  %v321_v59 = vpop.permute.xlu0 %320 }
  0xdf   : > { %v324_v62 = vsel %vm322_vm8, %v319_v54, %v321_v59  ;;  %v384_v2 = vsel %vm353_vm6, %v378_v0, %v321_v59  ;;  %v323_v10 = vsel %vm322_vm8, %v317_v58, %v319_v54 }
  0xe0   : > { %v382_v9 = vsel %vm353_vm6, %v375_v1, %v324_v62  ;;  %v380_v18 = vsel %vm353_vm6, %v372_v14, %v323_v10 }
  0xe2   : > { %v330_v3 = vpop.permute.xlu1 %329  ;;  %v328_v4 = vpop.permute.xlu0 %327 }
  0xe3   : > { %v333_v7 = vsel %vm331_vm10, %v328_v4, %v330_v3  ;;  %v392_v8 = vsel %vm360_vm5, %v384_v2, %v330_v3 }
  0xe4   : > { %702 = vmatpush3.bf16.msra.mxu1 %v392_v8  ;;  %v389_v12 = vsel %vm360_vm5, %v382_v9, %v333_v7 }
  0xe5   : > { %409 = vmatprep.subr.bf16.mxu0 %v389_v12  ;;  %703 = vmatprep.subr.bf16.mxu1 %v922_v11  ;;  %v237_v11 = vpack.c.bf16 %v236_v19, %v236_v19 }
  0xe6   : > { %v335_v15 = vpop.permute.xlu1 %334  ;;  %v326_v16 = vpop.permute.xlu0 %325 }
  0xe7   : > { %v332_v17 = vsel %vm331_vm10, %v326_v16, %v328_v4 }
  0xe8   : > { %v386_v20 = vsel %vm360_vm5, %v380_v18, %v332_v17  ;;  %vm512_vm5 = vcmask 932864  }
  0xe9   : > { %410 = vmatpush1.bf16.msra.mxu0 %v386_v20 }
  0xea   : > { %v339_v21 = vpop.permute.xlu1 %338  ;;  %v337_v22 = vpop.permute.xlu0 %336 }
  0xeb   : > { %v341_v23 = vsel %vm340_vm11, %v335_v15, %v337_v22  ;;  %v342_v24 = vsel %vm340_vm11, %v337_v22, %v339_v21  ;;  %v405_v25 = vsel %vm343_vm2, %v339_v21, 0 }
  0xec   : > { %686 = vmatprep.subr.msk.bf16.mxu0 %vm343_vm2, %v342_v24  ;;  %704 = vmatpush3.bf16.msra.mxu1 %v405_v25  ;;  %v399_v26 = vsel %vm343_vm2, %v341_v23, 0  ;;  %vm552_vm2 = vcmask 654336  }
  0xed   : > { %412 = vmatpush1.bf16.msra.mxu0 %v399_v26 }
  0xef   : > { %706 = vmatmul.mubr.msk.bf16.vlgmr.msra.gmra.mrb[0].mxu1 %vm394_vm12, %v237_v11 }
  0xf0   : > { %687 = vmatmul.mubr.msk.bf16.vlgmr.msra.gmra.mrb[0].mxu0 %vm394_vm12, %v237_v11 }
  0xfb   : > { %v568_v35 = vpop.permute.xlu1 %567 }
 0x1c2   : > { %v482_v27 = vpop.f32.mrb[0].mxu1 }
 0x1c3   : > { %536 = vrot.lane.b32.xlu1 %v482_v27, %s931_s6  ;;  %v441_v28 = vpop.f32.mrb[0].mxu0  ;;  %v707_v29 = vpop.f32.mrb[1].mxu1 }
 0x1c4   : > { %489 = vrot.lane.b32.xlu0 %v441_v28, %s920_s10  ;;  %v443_v30 = vpop.f32.mrb[1].mxu0  ;;  %v485_v31 = vpop.f32.mrb[2].mxu1  ;;  %s938_s10 = smov 118  }
 0x1c5   : > { %v445_v32 = vpop.f32.mrb[2].mxu0  ;;  %v708_v33 = vpop.f32.mrb[3].mxu1 }
 0x1c6   : > { %v446_v34 = vpop.f32.mrb[3].mxu0 }
 0x1c7   : > { %508 = vrot.lane.b32.xlu1 %v441_v28, %s932_s7 }
 0x1c8   : > { %492 = vrot.lane.b32.xlu0 %v441_v28, %s933_s8  ;;  %s1167_s8 = scalar_lea.hbm %s1215_s4, %s694_s30 }
 0x1cb   : > { %515 = vrot.lane.b32.xlu1 %v443_v30, %s934_s9 }
 0x1cc   : > { %495 = vrot.lane.b32.xlu0 %v441_v28, %s935_s11 }
 0x1cf   : > { %521 = vrot.lane.b32.xlu1 %v443_v30, %s925_s14 }
 0x1d0   : > { %498 = vrot.lane.b32.xlu0 %v441_v28, %s936_s13  ;;  %s847_s13 = sshll.u32 %s943_s19, 4  ;;  %s848_s13 = int_to_ptr.vmem [resolvable:$false] %s847_s13 }
 0x1d3   : > { %524 = vrot.lane.b32.xlu1 %v443_v30, %s937_s20  ;;  %s849_s20 = scalar_lea.vmem %s848_s13, 256 }
 0x1d4   : > { %501 = vrot.lane.b32.xlu0 %v441_v28, %s938_s10 }
 0x1d7   : > { %527 = vrot.lane.b32.xlu1 %v443_v30, %s939_s22 }
 0x1d8   : > { %504 = vrot.lane.b32.xlu0 %v441_v28, %s940_s23 }
 0x1db   : > { %530 = vrot.lane.b32.xlu1 %v443_v30, %s941_s28 }
 0x1dc   : > { %518 = vrot.lane.b32.xlu0 %v443_v30, %s923_s12  ;;  %s217_s12 = sand.u32 1, %s905_s16  }
 0x1dd   : > { %s683_s14 = sshll.u32 %s217_s12, 3  ;;  %s578_s9 = scalar_lea.sflag [#allocation4], %s217_s12 }
 0x1de   : > { %s219_s5 = scalar_lea.vmem [#allocation7], %s683_s14 }
 0x1df   : > { %541 = vrot.lane.b32.xlu1 %v482_v27, %s942_s29  ;;  %s592_s27 = sshll.u32 %s219_s5, 4  ;;  %s1169_s27 = int_to_ptr.vmem [resolvable:$true] %s592_s27 }
 0x1e0   : > { %534 = vrot.lane.b32.xlu0 %v443_v30, %s931_s6  ;;  %s843_s11 = scalar_lea.vmem %s1169_s27, 128  ;;  %p850_p4 = scmp.lt.s32.totalorder %s1169_s27, %s848_s13 }
 0x1e1   : > { %p844_p10 = scmp.ne.s32.totalorder %s1169_s27, %s843_s11  ;;  %p851_p7 = scmp.lt.s32.totalorder %s849_s20, %s843_s11 }
 0x1e3   : > { %p845_p12 = pnand %p844_p10, %p1007_p5  ;;  %p852_p8 = por %p851_p7, %p850_p4 }
 0x1e4   : > { %510 = vrot.lane.b32.xlu0 %v443_v30, %s932_s7 }
 0x1e5   : > { %p846_p3 = pneg %p845_p12 }
 0x1e7   : > { %p853_p11 = pnand %p852_p8, %p846_p3 }
 0x235   : > { %v537_v36 = vpop.permute.xlu1 %536 }
 0x236   : > { %v490_v37 = vpop.permute.xlu0 %489 }
 0x237   : > { %v545_v53 = vsel %vm544_vm13, %v441_v28, %v490_v37 }
 0x239   : > { %v509_v38 = vpop.permute.xlu1 %508 }
 0x23a   : > { %v493_v39 = vpop.permute.xlu0 %492 }
 0x23b   : > { %v547_v56 = vsel %vm546_vm14, %v545_v53, %v493_v39 }
 0x23d   : > { %v516_v40 = vpop.permute.xlu1 %515 }
 0x23e   : > { %v496_v41 = vpop.permute.xlu0 %495 }
 0x23f   : > { %v549_v59 = vsel %vm548_vm15, %v547_v56, %v496_v41 }
 0x241   : > { %v522_v42 = vpop.permute.xlu1 %521 }
 0x242   : > { %v499_v43 = vpop.permute.xlu0 %498 }
 0x243   : > { %v551_v61 = vsel %vm550_vm1, %v549_v59, %v499_v43 }
 0x245   : > { %v525_v44 = vpop.permute.xlu1 %524 }
 0x246   : > { %v502_v45 = vpop.permute.xlu0 %501 }
 0x247   : > { %v553_v63 = vsel %vm552_vm2, %v551_v61, %v502_v45 }
 0x249   : > { %v528_v46 = vpop.permute.xlu1 %527 }
 0x24a   : > { %v505_v47 = vpop.permute.xlu0 %504 }
 0x24b   : > { %v555_v2 = vsel %vm554_vm3, %v553_v63, %v505_v47 }
 0x24d   : > { %v531_v49 = vpop.permute.xlu1 %530 }
 0x24e   : > { %v519_v48 = vpop.permute.xlu0 %518 }
 0x24f   : > { %v558_v50 = vsel %vm544_vm13, %v516_v40, %v519_v48 }
 0x250   : > { %v559_v51 = vsel %vm546_vm14, %v558_v50, %v522_v42 }
 0x251   : > { %v560_v52 = vsel %vm548_vm15, %v559_v51, %v525_v44  ;;  %v542_v62 = vpop.permute.xlu1 %541 }
 0x252   : > { %v535_v54 = vpop.permute.xlu0 %534  ;;  %v561_v55 = vsel %vm550_vm1, %v560_v52, %v528_v46 }
 0x253   : > { %v539_v57 = vsel %vm538_vm0, %v535_v54, %v537_v36  ;;  %v562_v58 = vsel %vm552_vm2, %v561_v55, %v531_v49 }
 0x254   : > { %v563_v60 = vsel %vm554_vm3, %v562_v58, %v539_v57 }
 0x255   : > { %v564_v0 = vsel %vm556_vm4, %v563_v60, %v542_v62 }
 0x256   : > { %v511_v1 = vpop.permute.xlu0 %510  ;;  %v571_v5 = vadd.f32 %v568_v35, %v564_v0 }
 0x257   : > { %v513_v3 = vsel %vm512_vm5, %v509_v38, %v511_v1 }
 0x258   : > { %v557_v4 = vsel %vm556_vm4, %v555_v2, %v513_v3 }
 0x259   : > { %v570_v6 = vadd.f32 %v568_v35, %v557_v4 }
 0x25b   : > { %v574_v7 = vcombine.low %v570_v6, %v571_v5 }
 0x25d   : > { %576 = vst [vmem:[%s219_s5] sm:$0xff] %v574_v7 }
 0x25e   : > { %856 = shalt.err (!%p853_p11)
}
 0x25f   : > { %s857_s10 = scalar_lea.hbm %s1167_s8, 128  ;;  %s861_s28 = scalar_lea.hbm %s1215_s4, 256 }
 0x260   : > { %p858_p13 = scmp.ne.s32.totalorder %s1167_s8, %s857_s10  ;;  %p862_p6 = scmp.lt.u32.totalorder %s1167_s8, %s1215_s4 }
 0x261   : > { %p863_p9 = scmp.lt.u32.totalorder %s861_s28, %s857_s10  ;;  %p865_p10 = scmp.lt.u32.totalorder %s857_s10, %s1167_s8 }
 0x262   : > { %p859_p0 = pnand %p858_p13, %p1007_p5 }
 0x263   : > { %p864_p2 = por %p863_p9, %p862_p6 }
 0x264   : > { %p860_p1 = pneg %p859_p0 }
 0x265   : > { %p866_p12 = por %p865_p10, %p864_p2 }
 0x267   : > { %p867_p3 = pnand %p866_p12, %p860_p1 }
 0x269   : > { %870 = shalt.err (!%p867_p3)
}
 0x26a   : > { %718 = dma.vmem_to_hbm [thread:$0]  (%p1007_p5), %s1169_s27, 128, %s1167_s8, %s578_s9  }
 0x26b PF: > { %p735_p4 = scmp.ge.s32.totalorder %s913_s18, 2  ;;  %s604_s14 = sand.u32 1, %s901_s15  }
 0x26c   : > { %p1225_p7 = scmp.ne.s32.totalorder %s1218_s26, 0  ;;  %s605_s30 = scalar_lea.sflag [#allocation4], %s604_s14 }
 0x26e   : > { %p728_p8 = pnand %p735_p4, %p1225_p7 }
 0x270   : > { %896 = dma.done.wait (!%p728_p8), %s605_s30, 128  }
 0x271   : > { %898 = vsyncadd (!%p728_p8), %s605_s30, 4294967168  ;;  %p16_p11 = scmp.ge.s32.totalorder %s994_s21, 4   ;;  %s1226_s15 = smov %s905_s16 }
 0x272   : > { %s1227_s16 = smov %s909_s17  ;;  %s1228_s17 = smov %s1005_s24 }
 0x273   : > { %s1229_s18 = smov %s994_s21  ;;  %18 = sbr.rel (!%p16_p11) target bundleno = 5 (0x5), region = 83 }
 0x27a   :  { %610 = vsyncpa [#allocation3], 1 }
 0x27b   :  { %612 = vsyncpa [#allocation3 + $0x1], 1 }
 0x27c   :  { %613 = vsyncpa [#allocation4], 1 }
 0x27d   :  { %615 = vsyncpa [#allocation4 + $0x1], 1 }
 0x27e   :  { %616 = vsyncpa [#allocation5], 1 }
 0x27f   :  { %618 = vsyncpa [#allocation5 + $0x1], 1 }

</bundles_post_ra>
